<compile_context>
chip_gen: v6e
topology: v6e:2x2x1
jax: 0.10.0
libtpu: 0.0.40
codegen_flags: <defaults>
</compile_context>

<pallas_src>
import functools

import jax
import jax.numpy as jnp
from jax.experimental import pallas as pl
from jax.experimental.pallas import tpu as pltpu


def _round_up(x, m):
    return (x + m - 1) // m * m


def _vmem_limit_bytes():
    """Generation-aware scoped-VMEM limit: ~3/4 of physical VMEM, capped."""
    cap = None
    try:
        cap = int(pltpu.get_tpu_info().vmem_capacity_bytes)
    except Exception:
        cap = None
    if not cap or cap <= 0:
        cap = 64 * 1024 * 1024  # conservative: v7x per-TensorCore VMEM
    limit = min(cap * 3 // 4, 100 * 1024 * 1024)
    return max(32 * 1024 * 1024, int(limit))


def _pick_tile_m(M, H, itemsize, *, training, vmem_limit):
    """Largest row tile whose double-buffered x slab fits the VMEM budget.

    Training keeps extra headroom for the PRNG-bits / keep-mask temporaries.
    A secondary cap keeps >= ~8 grid steps (megacore balance on v7x, pipeline
    overlap) whenever each step would still stream a multi-MiB slab.
    """
    sublane = max(8, 32 // itemsize)            # f32 -> 8, bf16 -> 16, int8 -> 32
    budget = vmem_limit // (3 if training else 2)   # bytes for the 2 x-tile buffers
    tm = budget // (2 * H * itemsize)
    tm = max(sublane, min(tm, 8192))
    min_rows = max(sublane, (2 * 1024 * 1024) // max(1, H * itemsize))  # >= 2 MiB/step
    eight_way = _round_up(-(-M // 8), sublane)
    if eight_way >= min_rows:
        tm = min(tm, eight_way)
    tm = (tm // sublane) * sublane
    tm = max(sublane, min(tm, _round_up(M, sublane)))
    return int(tm)


def _qa_head_kernel(seed_ref, x_ref, w_ref, b_ref, out_ref, *,
                    keep_threshold, train, bf16_dot):
    # seed_ref: SMEM (1,) int32    x_ref: (tm, H)    w_ref: (H, 2)
    # b_ref: (1, 2) f32            out_ref: (tm, 2)
    x = x_ref[...]

    if train:
        # Fused inverted dropout.  The 1/(1-p) scale is already folded into the
        # weight by the wrapper, so this is just: generate bits, compare against
        # an integer threshold, select in the native dtype (no f32 round-trip).
        pltpu.prng_seed(seed_ref[0], pl.program_id(0))   # distinct stream per tile
        bits = pltpu.bitcast(pltpu.prng_random_bits(x.shape), jnp.uint32)
        keep = bits >= jnp.uint32(keep_threshold)        # P(keep) = 1 - dropout_p
        x = jnp.where(keep, x, jnp.zeros_like(x))

    w = w_ref[...]
    if bf16_dot and x.dtype == jnp.float32:
        # v5e knob: its MXU has no fast f32 path; bf16 operands keep the kernel
        # cleanly DMA-bound.  Accumulation stays f32 below.
        x = x.astype(jnp.bfloat16)
        w = w.astype(jnp.bfloat16)

    logits = jnp.dot(x, w, preferred_element_type=jnp.float32) + b_ref[...]
    out_ref[...] = logits.astype(out_ref.dtype)


def qa_head_forward(hidden_states, weight, bias, *, dropout_p=0.1, train=False,
                    seed=0, tile_m=None, bf16_dot=False):
    """hidden_states: [B, S, H]; weight: [H, 2] (transpose of PyTorch's [2, H]
    storage — identical semantics); bias: [2].

    Returns (start_logits, end_logits), each [B, S].  train=False matches the
    PyTorch module in eval mode (dropout = identity); train=True applies fused
    inverted dropout with probability `dropout_p`.
    """
    B, S, H = hidden_states.shape
    M = B * S
    out_dtype = hidden_states.dtype
    itemsize = jnp.dtype(hidden_states.dtype).itemsize
    use_dropout = bool(train) and float(dropout_p) > 0.0
    if use_dropout and float(dropout_p) >= 1.0:
        raise ValueError("fused dropout requires 0 <= dropout_p < 1")

    vmem_limit = _vmem_limit_bytes()
    if tile_m is None:
        tile_m = _pick_tile_m(M, H, itemsize, training=use_dropout,
                              vmem_limit=vmem_limit)

    x2d = hidden_states.reshape(M, H)   # no padding: ragged edge block is masked

    # Fold the inverted-dropout scale into the tiny [H, 2] weight so the kernel
    # needs only a select (no per-element multiply / extra rounding).
    w = weight
    keep_threshold = 0
    if use_dropout:
        keep_threshold = min(int(round(float(dropout_p) * 2.0 ** 32)), 2 ** 32 - 1)
        w = (weight.astype(jnp.float32) / (1.0 - float(dropout_p))).astype(weight.dtype)

    b2d = bias.reshape(1, 2).astype(jnp.float32)
    seed_arr = jnp.asarray([seed], dtype=jnp.int32)

    kernel = functools.partial(_qa_head_kernel, keep_threshold=keep_threshold,
                               train=use_dropout, bf16_dot=bool(bf16_dot))

    w_itemsize = jnp.dtype(w.dtype).itemsize
    cost = pl.CostEstimate(
        flops=2 * M * H * 2,
        transcendentals=0,
        bytes_accessed=(M * H * itemsize                       # activation read (dominant)
                        + H * 2 * w_itemsize                   # weight
                        + M * 2 * jnp.dtype(out_dtype).itemsize),  # merged logits out
    )

    logits2d = pl.pallas_call(
        kernel,
        out_shape=jax.ShapeDtypeStruct((M, 2), out_dtype),
        grid_spec=pltpu.PrefetchScalarGridSpec(
            num_scalar_prefetch=1,                             # dropout seed in SMEM
            grid=(pl.cdiv(M, tile_m),),
            in_specs=[
                pl.BlockSpec((tile_m, H), lambda i, seed_ref: (i, 0)),
                pl.BlockSpec((H, 2), lambda i, seed_ref: (0, 0)),
                pl.BlockSpec((1, 2), lambda i, seed_ref: (0, 0)),
            ],
            out_specs=pl.BlockSpec((tile_m, 2), lambda i, seed_ref: (i, 0)),
        ),
        compiler_params=pltpu.CompilerParams(
            dimension_semantics=("parallel",),                 # megacore-shard row grid
            vmem_limit_bytes=vmem_limit,
        ),
        cost_estimate=cost,
    )(seed_arr, x2d, w, b2d)

    start_logits = logits2d[:, 0].reshape(B, S)
    end_logits = logits2d[:, 1].reshape(B, S)
    return start_logits, end_logits


if __name__ == "__main__":
    # Small shapes consistent with the module: [batch=2, seq=8, hidden=32].
    B, S, H = 2, 8, 32

    key = jax.random.PRNGKey(0)
    k_x, k_w = jax.random.split(key)

    hidden_states = jax.random.normal(k_x, (B, S, H), dtype=jnp.float32)

    # Deterministic parameter init matching the PyTorch __init__:
    #   nn.Linear(hidden_size, 2) with normal(std=0.02) weight, zero bias.
    weight = 0.02 * jax.random.normal(k_w, (H, 2), dtype=jnp.float32)
    bias = jnp.zeros((2,), dtype=jnp.float32)

    ref = (hidden_states.reshape(B * S, H) @ weight + bias).reshape(B, S, 2)

    # ---- eval mode (dropout = identity), f32 ----
    start_logits, end_logits = qa_head_forward(hidden_states, weight, bias,
                                               train=False)
    jax.block_until_ready((start_logits, end_logits))
    assert start_logits.shape == (B, S) and end_logits.shape == (B, S)
    assert jnp.allclose(start_logits, ref[..., 0], atol=1e-5)
    assert jnp.allclose(end_logits, ref[..., 1], atol=1e-5)

    # ---- eval mode, bf16 streaming (halves the dominant HBM read traffic) ----
    s_bf, e_bf = qa_head_forward(hidden_states.astype(jnp.bfloat16),
                                 weight.astype(jnp.bfloat16), bias, train=False)
    jax.block_until_ready((s_bf, e_bf))
    assert s_bf.dtype == jnp.bfloat16 and e_bf.dtype == jnp.bfloat16
    assert jnp.allclose(s_bf.astype(jnp.float32), ref[..., 0], atol=2e-2, rtol=5e-2)
    assert jnp.allclose(e_bf.astype(jnp.float32), ref[..., 1], atol=2e-2, rtol=5e-2)

    # ---- training mode, fused dropout (TPU hardware PRNG) ----
    # TODO(synk): pltpu.prng_seed / prng_random_bits have no CPU/interpret
    # lowering, so the fused-dropout path is only exercised on a real TPU.
    if jax.devices()[0].platform == "tpu":
        s_tr, e_tr = qa_head_forward(hidden_states, weight, bias,
                                     dropout_p=0.5, train=True, seed=1234)
        jax.block_until_ready((s_tr, e_tr))
        assert s_tr.shape == (B, S) and e_tr.shape == (B, S)
        assert bool(jnp.all(jnp.isfinite(s_tr))) and bool(jnp.all(jnp.isfinite(e_tr)))
        # Dropout must actually perturb the logits relative to eval mode.
        assert not bool(jnp.allclose(s_tr, ref[..., 0], atol=1e-5))

    print("KERNEL_OK")
</pallas_src>

<mosaic_0001>
module attributes {stable_mosaic.version = 11 : i64} {
  func.func @_qa_head_kernel(%arg0: i32, %arg1: memref<1xi32, #tpu.memory_space<smem>>, %arg2: memref<16x32xf32, #tpu.memory_space<vmem>>, %arg3: memref<32x2xf32, #tpu.memory_space<vmem>>, %arg4: memref<1x2xf32, #tpu.memory_space<vmem>>, %arg5: memref<16x2xf32, #tpu.memory_space<vmem>>) attributes {dimension_semantics = [#tpu.dimension_semantics<parallel>], iteration_bounds = array<i64: 1>, scalar_prefetch = 1 : i64, scratch_operands = 0 : i64, tpu.core_type = #tpu.core_type<tc>, window_params = [{transform_indices = @transform_0, window_bounds = array<i64: 16, 32>}, {pipeline_mode = #tpu.pipeline_mode<synchronous>, transform_indices = @transform_1, window_bounds = array<i64: 32, 2>}, {pipeline_mode = #tpu.pipeline_mode<synchronous>, transform_indices = @transform_2, window_bounds = array<i64: 1, 2>}, {transform_indices = @transform_3, window_bounds = array<i64: 16, 2>}]} {
    %c0 = arith.constant 0 : index
    %c0_0 = arith.constant 0 : index
    %0 = vector.load %arg2[%c0, %c0_0] : memref<16x32xf32, #tpu.memory_space<vmem>>, vector<16x32xf32>
    %c0_1 = arith.constant 0 : index
    %c0_2 = arith.constant 0 : index
    %1 = vector.load %arg3[%c0_1, %c0_2] : memref<32x2xf32, #tpu.memory_space<vmem>>, vector<32x2xf32>
    %cst = arith.constant dense<0.000000e+00> : vector<16x2xf32>
    %2 = tpu.matmul %0, %1, %cst {dimension_numbers = #tpu.dot_dimension_numbers<[1], [0], [0], [1], [0, 0, 1, 1], [], []>} : vector<16x32xf32>, vector<32x2xf32>, vector<16x2xf32> -> vector<16x2xf32>
    %c0_3 = arith.constant 0 : index
    %c0_4 = arith.constant 0 : index
    %3 = vector.load %arg4[%c0_3, %c0_4] : memref<1x2xf32, #tpu.memory_space<vmem>>, vector<1x2xf32>
    %4 = vector.broadcast %3 : vector<1x2xf32> to vector<16x2xf32>
    %5 = arith.addf %2, %4 : vector<16x2xf32>
    %c0_5 = arith.constant 0 : index
    %c0_6 = arith.constant 0 : index
    %6 = vector.load %arg5[%c0_5, %c0_6] : memref<16x2xf32, #tpu.memory_space<vmem>>, vector<16x2xf32>
    tpu.vector_store %arg5[%c0_5, %c0_6], %5 {strides = array<i32>} : memref<16x2xf32, #tpu.memory_space<vmem>>, vector<16x2xf32>,
    return
  }
  func.func @transform_0(%arg0: i32, %arg1: memref<1xi32, #tpu.memory_space<smem>>) -> (i32, i32) {
    %c0_i32 = arith.constant 0 : i32
    %c0_i32_0 = arith.constant 0 : i32
    return %arg0, %c0_i32 : i32, i32
  }
  func.func @transform_1(%arg0: i32, %arg1: memref<1xi32, #tpu.memory_space<smem>>) -> (i32, i32) {
    %c0_i32 = arith.constant 0 : i32
    %c0_i32_0 = arith.constant 0 : i32
    %c0_i32_1 = arith.constant 0 : i32
    return %c0_i32, %c0_i32_0 : i32, i32
  }
  func.func @transform_2(%arg0: i32, %arg1: memref<1xi32, #tpu.memory_space<smem>>) -> (i32, i32) {
    %c0_i32 = arith.constant 0 : i32
    %c0_i32_0 = arith.constant 0 : i32
    %c0_i32_1 = arith.constant 0 : i32
    return %c0_i32, %c0_i32_0 : i32, i32
  }
  func.func @transform_3(%arg0: i32, %arg1: memref<1xi32, #tpu.memory_space<smem>>) -> (i32, i32) {
    %c0_i32 = arith.constant 0 : i32
    %c0_i32_0 = arith.constant 0 : i32
    return %arg0, %c0_i32 : i32, i32
  }
}

</mosaic_0001>

<bundles_post_ra>
// kernel: tpu_custom_call.1
= control target key start
LH: loop header
LB: loop body
LE: loop exit
PB: predicated region body
PF: predicated region fallthrough
CT: control target
= control target key end

     0   :  { %vm29_vm0 = vcmask 261120   ;;  %vm111_vm1 = vcmask 15360   ;;  %s192_s0 = inlined_call_operand.<no memory space> [shape: s32[1], index: 0, kind: input, shape index: {}]   ;;  %s193_s2 = inlined_call_operand.vmem [shape: f32[32,2], index: 2, kind: input, shape index: {}]   ;;  %s194_s1 = inlined_call_operand.vmem [shape: f32[16,32], index: 1, kind: input, shape index: {}]   ;;  %s195_s3 = inlined_call_operand.vmem [shape: f32[1,2], index: 3, kind: input, shape index: {}]   ;;  %s196_s4 = inlined_call_operand.vmem [shape: f32[16,2], index: 4, kind: output, shape index: {}]  }
   0x1   :  { %v21_v0 = vld [vmem:[%s193_s2 + $0x18] sm:$0xff]  ;;  %v20_v1 = vld [vmem:[%s193_s2 + $0x10] sm:$0xff]  ;;  %v16_v2 = vld [vmem:[%s194_s1] sm:$0xff] }
   0x2   :  { %127 = vmatprep.subr.mxu0 %v21_v0  ;;  %v19_v3 = vld [vmem:[%s193_s2 + $0x8] sm:$0xff]  ;;  %135 = vmatprep.mubr.msk.f32.mxu0 %vm29_vm0, %v16_v2  ;;  %v18_v4 = vld [vmem:[%s193_s2] sm:$0xff] }
   0x3   :  { %128 = vmatpush3.msra.mxu0 %v21_v0  ;;  %v17_v5 = vld [vmem:[%s194_s1 + $0x8] sm:$0xff]  ;;  %v118_v6 = vld [vmem:[%s195_s3] ss:$0 sm:$0xff] }
   0x4   :  { %129 = vmatprep.subr.mxu0 %v20_v1 }
   0x5   :  { %130 = vmatpush3.msra.mxu0 %v20_v1 }
   0x6   :  { %131 = vmatprep.subr.mxu0 %v19_v3 }
   0x7   :  { %132 = vmatpush3.msra.mxu0 %v19_v3 }
   0x8   :  { %133 = vmatprep.subr.mxu0 %v18_v4 }
   0x9   :  { %134 = vmatpush3.msra.mxu0 %v18_v4 }
   0xa   :  { %136 = vmatmul.mubr.msk.f32.vlgmr.msra.gmra.mxu0 %vm29_vm0, %v17_v5 }
  0xca   :  { %v137_v7 = vpop.f32.mrf.mxu0 }
  0xcb   :  { %v108_v8 = vadd.f32 %v137_v7, %v118_v6 }
  0xcc   :  { %v102_v9 = vpop.f32.mrf.mxu0 }
  0xcd   :  { %113 = vst.msk [vmem:[%s196_s4 + $0x8] sm:$0xff] %vm111_vm1, %v108_v8  ;;  %v103_v10 = vadd.f32 %v118_v6, %v102_v9 }
  0xcf   :  { %112 = vst.msk [vmem:[%s196_s4] sm:$0xff] %vm111_vm1, %v103_v10 }

</bundles_post_ra>
